<compile_context>
chip_gen: v6e
topology: v6e:2x2x1
jax: 0.10.0
libtpu: 0.0.40
codegen_flags: <defaults>
</compile_context>

<pallas_src>
import functools
import math

import jax
import jax.numpy as jnp
from jax.experimental import pallas as pl
from jax.experimental.pallas import tpu as pltpu

_OFF = 8  # sublane-aligned interior offset inside each padded VMEM scratch buffer


def _fused_conv_extractor_kernel(x_ref, p_ref, out_ref, *pad_refs, meta, batch):
    """All ConvExtractor layers, whole batch, one invocation.

    x_ref    : (B, L0, C0)    channels-last input
    p_ref    : (R, Cmax)      packed params: per layer an im2col weight block
                              (K*Cin, Cout) with bn_scale folded in, plus one
                              shift row (b*bn_scale + bn_shift)
    out_ref  : (B, C_last, L_last)  channel-major output (flatten = free bitcast)
    pad_refs : per-layer zero-halo padded activation scratch (VMEM)
    """
    n = len(meta)

    # Zero ONLY the 'same'-padding halo rows; the interior rows are always fully
    # overwritten by the input seed / previous layer's pooled activation.
    for i, m in enumerate(meta):
        left, right, L, Cin = m["left"], m["right"], m["L"], m["Cin"]
        if left:
            pad_refs[i][:, _OFF - left:_OFF, :] = jnp.zeros((batch, left, Cin), jnp.float32)
        if right:
            pad_refs[i][:, _OFF + L:_OFF + L + right, :] = jnp.zeros((batch, right, Cin), jnp.float32)

    # Seed layer 0's buffer with the raw input at the aligned interior offset.
    pad_refs[0][:, _OFF:_OFF + meta[0]["L"], :] = x_ref[...]

    for i, m in enumerate(meta):
        K, left, L, Cin, Cout = m["K"], m["left"], m["L"], m["Cin"], m["Cout"]

        # Static views/loads into the single packed param operand (no extra DMAs).
        w = p_ref[m["w_row"]:m["w_row"] + K * Cin, 0:Cout]      # (K*Cin, Cout)
        shift = p_ref[m["s_row"]:m["s_row"] + 1, 0:Cout]        # (1, Cout)

        xp = pad_refs[i][...]            # (B, _OFF + L + right, Cin), zeroed halos
        o0 = _OFF - left                 # first tap starts 'left' rows before the data

        # Conv1d('same') as ONE im2col matmul per layer: concat the K tap slices
        # along the lane axis (width K*Cin <= 24), fold batch into the M dimension,
        # fp32 contract precision on the MXU for f32 parity with PyTorch.
        cols = jnp.concatenate([xp[:, o0 + k:o0 + k + L, :] for k in range(K)], axis=-1)
        acc = jnp.dot(cols.reshape(batch * L, K * Cin), w,
                      preferred_element_type=jnp.float32,
                      precision=jax.lax.Precision.HIGHEST)       # (B*L, Cout)

        # Conv bias + eval-mode BatchNorm: scale already folded into w host-side,
        # so only the shift remains, then ReLU.
        acc = jnp.maximum(acc + shift, 0.0)
        # TODO(synk): Dropout is identity at inference; no stochastic op implemented.

        # MaxPool1d(kernel_size=2, stride=2), floor length, whole batch at once
        # (reshapes only split the sublane dim; lane dim unchanged).
        Lp = L // 2
        pooled = jnp.max(
            acc.reshape(batch, L, Cout)[:, :2 * Lp, :].reshape(batch, Lp, 2, Cout),
            axis=2)                                              # (B, Lp, Cout)

        if i == n - 1:
            # Emit channel-major (B, Cout, Lp) so the PyTorch (B, C, L) flatten is a
            # free row-major reshape in the wrapper. Tiny static per-batch 2-D XLU
            # transposes (B=2) — kept 2-D to use the plainly-supported transpose path.
            for b in range(batch):
                out_ref[b, :, :] = pooled[b].T
        else:
            pad_refs[i + 1][:, _OFF:_OFF + Lp, :] = pooled


def prepare_params(params, hist_len, input_channel):
    """One-time host-side prep (NOT inside the traced forward).

    Folds bias + eval BatchNorm into each layer's weights/shift, rewrites the weights
    into tap-major im2col form (K*Cin, Cout), and packs everything into one f32
    operand. Returns (packed, meta, (out_channels_last, out_len_last))."""
    meta = []
    entries = []
    cur_len, cur_ch = hist_len, input_channel
    max_cout = max(int(p["w"].shape[0]) for p in params)
    row = 0
    for p in params:
        K = int(p["K"])
        Cout = int(p["w"].shape[0])
        Cin = cur_ch
        total = K - 1
        left, right = total // 2, total - total // 2            # PyTorch 'same' split
        scale = p["bn_scale"].astype(jnp.float32)
        # (Cout, Cin, K) -> tap-major (K*Cin, Cout), bn_scale folded per out-channel.
        w2 = jnp.transpose(p["w"].astype(jnp.float32), (2, 1, 0)).reshape(K * Cin, Cout)
        w2 = w2 * scale[None, :]
        shift = (p["b"].astype(jnp.float32) * scale + p["bn_shift"].astype(jnp.float32))[None, :]

        w_row = row
        s_row = w_row + K * Cin
        row = ((s_row + 1 + 7) // 8) * 8                        # align next block to sublanes
        entries.append((w_row, w2))
        entries.append((s_row, shift))
        meta.append(dict(K=K, left=left, right=right, L=cur_len, Cin=Cin, Cout=Cout,
                         w_row=w_row, s_row=s_row))
        cur_ch = Cout
        cur_len //= 2

    packed = jnp.zeros((row, max_cout), jnp.float32)
    for r, blk in entries:
        packed = packed.at[r:r + blk.shape[0], :blk.shape[1]].set(blk)
    return packed, tuple(meta), (cur_ch, cur_len)


def conv_extractor_forward(x, packed, meta):
    """x: (B, hist_len, input_channel) f32 -> (B, out_channels[-1] * final_len)."""
    B = x.shape[0]
    assert all(m["left"] <= _OFF for m in meta)
    scratch = [pltpu.VMEM((B, _OFF + m["L"] + m["right"], m["Cin"]), jnp.float32)
               for m in meta]
    out_c = meta[-1]["Cout"]
    out_l = meta[-1]["L"] // 2

    kernel = functools.partial(_fused_conv_extractor_kernel, meta=meta, batch=B)
    # No grid / no BlockSpecs: the two (KB-sized) operands map whole into VMEM, so
    # there is exactly one launch and zero per-grid-step overhead. (Scale-out path if
    # B/hist_len grows: a batch grid axis with dimension_semantics=("parallel",).)
    y = pl.pallas_call(
        kernel,
        out_shape=jax.ShapeDtypeStruct((B, out_c, out_l), jnp.float32),
        scratch_shapes=scratch,
    )(x, packed)
    # (B, C, Lp) row-major -> (B, C*Lp) is layout-preserving: a free XLA bitcast,
    # reproducing PyTorch's (B, C, L).reshape(B, -1) flatten order.
    return y.reshape(B, -1)


def init_conv_extractor_params(key, hist_len, input_channel, out_channels,
                               kernel_sizes, batchnorm):
    """Deterministic parameter init matching the PyTorch module's shapes."""
    assert len(out_channels) == len(kernel_sizes)
    params = []
    cin = input_channel
    size = hist_len
    eps = 1e-5
    for cout, K in zip(out_channels, kernel_sizes):
        key, kw, kb = jax.random.split(key, 3)
        bound = 1.0 / math.sqrt(cin * K)                 # PyTorch Conv1d default range
        w = jax.random.uniform(kw, (cout, cin, K), jnp.float32, -bound, bound)
        b = jax.random.uniform(kb, (cout,), jnp.float32, -bound, bound)
        if batchnorm:
            gamma = jnp.ones((cout,), jnp.float32)
            beta = jnp.zeros((cout,), jnp.float32)
            rmean = jnp.zeros((cout,), jnp.float32)
            rvar = jnp.ones((cout,), jnp.float32)
            bn_scale = gamma / jnp.sqrt(rvar + eps)
            bn_shift = beta - rmean * bn_scale
        else:
            bn_scale = jnp.ones((cout,), jnp.float32)
            bn_shift = jnp.zeros((cout,), jnp.float32)
        params.append(dict(w=w, b=b, bn_scale=bn_scale, bn_shift=bn_shift, K=K))
        cin = cout
        size //= 2
    return params, cout * size


def reference_forward(x, params):
    """Pure-JAX reference (unfolded params, fp32-precision conv) for correctness."""
    B = x.shape[0]
    y = x
    for p in params:
        K = p["K"]
        total = K - 1
        left, right = total // 2, total - total // 2
        w_taps = jnp.transpose(p["w"], (2, 1, 0))
        conv = jax.lax.conv_general_dilated(
            y, w_taps, window_strides=(1,), padding=[(left, right)],
            dimension_numbers=("NWC", "WIO", "NWC"),
            precision=jax.lax.Precision.HIGHEST)
        conv = conv + p["b"][None, None, :]
        conv = conv * p["bn_scale"][None, None, :] + p["bn_shift"][None, None, :]
        conv = jnp.maximum(conv, 0.0)
        L = conv.shape[1]
        Lp = L // 2
        y = jnp.max(conv[:, :2 * Lp, :].reshape(B, Lp, 2, -1), axis=2)
    return jnp.transpose(y, (0, 2, 1)).reshape(B, -1)


if __name__ == "__main__":
    key = jax.random.PRNGKey(0)
    kx, kp = jax.random.split(key)

    # Small shapes consistent with the module: hist_len=16, input_channel=4.
    B, hist_len, input_channel = 2, 16, 4
    out_channels = [8, 16]
    kernel_sizes = [5, 3]

    params, out_dim = init_conv_extractor_params(
        kp, hist_len, input_channel, out_channels, kernel_sizes, batchnorm=True)

    # One-time host-side param prep (hoisted out of the traced forward).
    packed, meta, _ = prepare_params(params, hist_len, input_channel)

    x = jax.random.normal(kx, (B, hist_len, input_channel), jnp.float32)

    fwd = jax.jit(lambda inp, pp: conv_extractor_forward(inp, pp, meta))
    out = jax.block_until_ready(fwd(x, packed))
    assert out.shape == (B, out_dim), (out.shape, out_dim)

    ref = reference_forward(x, params)
    assert jnp.max(jnp.abs(out - ref)) < 1e-4, "mismatch vs. pure-JAX reference"

    print("KERNEL_OK")
</pallas_src>

<mosaic_0001>
module attributes {stable_mosaic.version = 11 : i64} {
  func.func @_fused_conv_extractor_kernel(%arg0: memref<2x16x4xf32, #tpu.memory_space<vmem>>, %arg1: memref<56x16xf32, #tpu.memory_space<vmem>>, %arg2: memref<2x16x4xf32, #tpu.memory_space<vmem>>, %arg3: memref<2x26x4xf32, #tpu.memory_space<vmem>>, %arg4: memref<2x17x8xf32, #tpu.memory_space<vmem>>) attributes {dimension_semantics = [], scalar_prefetch = 0 : i64, scratch_operands = 2 : i64, tpu.core_type = #tpu.core_type<tc>} {
    %cst = arith.constant 0.000000e+00 : f32
    %0 = vector.broadcast %cst : f32 to vector<2x2x4xf32>
    %c0 = arith.constant 0 : index
    %c6 = arith.constant 6 : index
    %c0_0 = arith.constant 0 : index
    %1 = vector.load %arg3[%c0, %c6, %c0_0] : memref<2x26x4xf32, #tpu.memory_space<vmem>>, vector<2x2x4xf32>
    tpu.vector_store %arg3[%c0, %c6, %c0_0], %0 {strides = array<i32>} : memref<2x26x4xf32, #tpu.memory_space<vmem>>, vector<2x2x4xf32>,
    %cst_1 = arith.constant 0.000000e+00 : f32
    %2 = vector.broadcast %cst_1 : f32 to vector<2x2x4xf32>
    %c0_2 = arith.constant 0 : index
    %c24 = arith.constant 24 : index
    %c0_3 = arith.constant 0 : index
    %3 = vector.load %arg3[%c0_2, %c24, %c0_3] : memref<2x26x4xf32, #tpu.memory_space<vmem>>, vector<2x2x4xf32>
    tpu.vector_store %arg3[%c0_2, %c24, %c0_3], %2 {strides = array<i32>} : memref<2x26x4xf32, #tpu.memory_space<vmem>>, vector<2x2x4xf32>,
    %cst_4 = arith.constant 0.000000e+00 : f32
    %4 = vector.broadcast %cst_4 : f32 to vector<2x1x8xf32>
    %c0_5 = arith.constant 0 : index
    %c7 = arith.constant 7 : index
    %c0_6 = arith.constant 0 : index
    %5 = vector.load %arg4[%c0_5, %c7, %c0_6] : memref<2x17x8xf32, #tpu.memory_space<vmem>>, vector<2x1x8xf32>
    tpu.vector_store %arg4[%c0_5, %c7, %c0_6], %4 {strides = array<i32>} : memref<2x17x8xf32, #tpu.memory_space<vmem>>, vector<2x1x8xf32>,
    %cst_7 = arith.constant 0.000000e+00 : f32
    %6 = vector.broadcast %cst_7 : f32 to vector<2x1x8xf32>
    %c0_8 = arith.constant 0 : index
    %c16 = arith.constant 16 : index
    %c0_9 = arith.constant 0 : index
    %7 = vector.load %arg4[%c0_8, %c16, %c0_9] : memref<2x17x8xf32, #tpu.memory_space<vmem>>, vector<2x1x8xf32>
    tpu.vector_store %arg4[%c0_8, %c16, %c0_9], %6 {strides = array<i32>} : memref<2x17x8xf32, #tpu.memory_space<vmem>>, vector<2x1x8xf32>,
    %c0_10 = arith.constant 0 : index
    %c0_11 = arith.constant 0 : index
    %c0_12 = arith.constant 0 : index
    %8 = vector.load %arg0[%c0_10, %c0_11, %c0_12] : memref<2x16x4xf32, #tpu.memory_space<vmem>>, vector<2x16x4xf32>
    %c0_13 = arith.constant 0 : index
    %c8 = arith.constant 8 : index
    %c0_14 = arith.constant 0 : index
    %9 = vector.load %arg3[%c0_13, %c8, %c0_14] : memref<2x26x4xf32, #tpu.memory_space<vmem>>, vector<2x16x4xf32>
    tpu.vector_store %arg3[%c0_13, %c8, %c0_14], %8 {strides = array<i32>} : memref<2x26x4xf32, #tpu.memory_space<vmem>>, vector<2x16x4xf32>,
    %c0_15 = arith.constant 0 : index
    %c0_16 = arith.constant 0 : index
    %10 = vector.load %arg1[%c0_15, %c0_16] : memref<56x16xf32, #tpu.memory_space<vmem>>, vector<20x8xf32>
    %c20 = arith.constant 20 : index
    %c0_17 = arith.constant 0 : index
    %11 = vector.load %arg1[%c20, %c0_17] : memref<56x16xf32, #tpu.memory_space<vmem>>, vector<1x8xf32>
    %c0_18 = arith.constant 0 : index
    %c0_19 = arith.constant 0 : index
    %c0_20 = arith.constant 0 : index
    %12 = vector.load %arg3[%c0_18, %c0_19, %c0_20] : memref<2x26x4xf32, #tpu.memory_space<vmem>>, vector<2x26x4xf32>
    %13 = vector.extract_strided_slice %12 {offsets = [0, 6, 0], sizes = [2, 16, 4], strides = [1, 1, 1]} : vector<2x26x4xf32> to vector<2x16x4xf32>
    %14 = vector.extract_strided_slice %12 {offsets = [0, 7, 0], sizes = [2, 16, 4], strides = [1, 1, 1]} : vector<2x26x4xf32> to vector<2x16x4xf32>
    %15 = vector.extract_strided_slice %12 {offsets = [0, 8, 0], sizes = [2, 16, 4], strides = [1, 1, 1]} : vector<2x26x4xf32> to vector<2x16x4xf32>
    %16 = vector.extract_strided_slice %12 {offsets = [0, 9, 0], sizes = [2, 16, 4], strides = [1, 1, 1]} : vector<2x26x4xf32> to vector<2x16x4xf32>
    %17 = vector.extract_strided_slice %12 {offsets = [0, 10, 0], sizes = [2, 16, 4], strides = [1, 1, 1]} : vector<2x26x4xf32> to vector<2x16x4xf32>
    %18 = tpu.concatenate %13, %14, %15, %16, %17 in 2 : vector<2x16x4xf32>, vector<2x16x4xf32>, vector<2x16x4xf32>, vector<2x16x4xf32>, vector<2x16x4xf32> -> vector<2x16x20xf32>
    %19 = vector.shape_cast %18 : vector<2x16x20xf32> to vector<32x20xf32>
    %cst_21 = arith.constant dense<0.000000e+00> : vector<32x8xf32>
    %20 = tpu.matmul %19, %10, %cst_21 {dimension_numbers = #tpu.dot_dimension_numbers<[1], [0], [0], [1], [0, 0, 1, 1], [], []>, precision = #tpu.contract_precision<fp32>} : vector<32x20xf32>, vector<20x8xf32>, vector<32x8xf32> -> vector<32x8xf32>
    %21 = vector.broadcast %11 : vector<1x8xf32> to vector<32x8xf32>
    %22 = arith.addf %20, %21 : vector<32x8xf32>
    %cst_22 = arith.constant 0.000000e+00 : f32
    %23 = vector.broadcast %cst_22 : f32 to vector<32x8xf32>
    %24 = arith.maximumf %22, %23 : vector<32x8xf32>
    %25 = vector.shape_cast %24 : vector<32x8xf32> to vector<2x16x8xf32>
    %26 = vector.shape_cast %25 : vector<2x16x8xf32> to vector<2x8x2x8xf32>
    %cst_23 = arith.constant dense<0xFF800000> : vector<2x8x8xf32>
    %27 = vector.multi_reduction <maximumf>, %26, %cst_23 [2] : vector<2x8x2x8xf32> to vector<2x8x8xf32>
    %c0_24 = arith.constant 0 : index
    %c8_25 = arith.constant 8 : index
    %c0_26 = arith.constant 0 : index
    %28 = vector.load %arg4[%c0_24, %c8_25, %c0_26] : memref<2x17x8xf32, #tpu.memory_space<vmem>>, vector<2x8x8xf32>
    tpu.vector_store %arg4[%c0_24, %c8_25, %c0_26], %27 {strides = array<i32>} : memref<2x17x8xf32, #tpu.memory_space<vmem>>, vector<2x8x8xf32>,
    %c24_27 = arith.constant 24 : index
    %c0_28 = arith.constant 0 : index
    %29 = vector.load %arg1[%c24_27, %c0_28] : memref<56x16xf32, #tpu.memory_space<vmem>>, vector<24x16xf32>
    %c48 = arith.constant 48 : index
    %c0_29 = arith.constant 0 : index
    %30 = vector.load %arg1[%c48, %c0_29] : memref<56x16xf32, #tpu.memory_space<vmem>>, vector<1x16xf32>
    %c0_30 = arith.constant 0 : index
    %c0_31 = arith.constant 0 : index
    %c0_32 = arith.constant 0 : index
    %31 = vector.load %arg4[%c0_30, %c0_31, %c0_32] : memref<2x17x8xf32, #tpu.memory_space<vmem>>, vector<2x17x8xf32>
    %32 = vector.extract_strided_slice %31 {offsets = [0, 7, 0], sizes = [2, 8, 8], strides = [1, 1, 1]} : vector<2x17x8xf32> to vector<2x8x8xf32>
    %33 = vector.extract_strided_slice %31 {offsets = [0, 8, 0], sizes = [2, 8, 8], strides = [1, 1, 1]} : vector<2x17x8xf32> to vector<2x8x8xf32>
    %34 = vector.extract_strided_slice %31 {offsets = [0, 9, 0], sizes = [2, 8, 8], strides = [1, 1, 1]} : vector<2x17x8xf32> to vector<2x8x8xf32>
    %35 = tpu.concatenate %32, %33, %34 in 2 : vector<2x8x8xf32>, vector<2x8x8xf32>, vector<2x8x8xf32> -> vector<2x8x24xf32>
    %36 = vector.shape_cast %35 : vector<2x8x24xf32> to vector<16x24xf32>
    %cst_33 = arith.constant dense<0.000000e+00> : vector<16x16xf32>
    %37 = tpu.matmul %36, %29, %cst_33 {dimension_numbers = #tpu.dot_dimension_numbers<[1], [0], [0], [1], [0, 0, 1, 1], [], []>, precision = #tpu.contract_precision<fp32>} : vector<16x24xf32>, vector<24x16xf32>, vector<16x16xf32> -> vector<16x16xf32>
    %38 = vector.broadcast %30 : vector<1x16xf32> to vector<16x16xf32>
    %39 = arith.addf %37, %38 : vector<16x16xf32>
    %cst_34 = arith.constant 0.000000e+00 : f32
    %40 = vector.broadcast %cst_34 : f32 to vector<16x16xf32>
    %41 = arith.maximumf %39, %40 : vector<16x16xf32>
    %42 = vector.shape_cast %41 : vector<16x16xf32> to vector<2x8x16xf32>
    %43 = vector.shape_cast %42 : vector<2x8x16xf32> to vector<2x4x2x16xf32>
    %cst_35 = arith.constant dense<0xFF800000> : vector<2x4x16xf32>
    %44 = vector.multi_reduction <maximumf>, %43, %cst_35 [2] : vector<2x4x2x16xf32> to vector<2x4x16xf32>
    %45 = vector.extract_strided_slice %44 {offsets = [0, 0, 0], sizes = [1, 4, 16], strides = [1, 1, 1]} : vector<2x4x16xf32> to vector<1x4x16xf32>
    %46 = vector.shape_cast %45 : vector<1x4x16xf32> to vector<4x16xf32>
    %47 = tpu.transpose %46, [1, 0] : vector<4x16xf32> -> vector<16x4xf32>
    %c0_36 = arith.constant 0 : index
    %c0_37 = arith.constant 0 : index
    %c0_38 = arith.constant 0 : index
    %48 = vector.load %arg2[%c0_36, %c0_37, %c0_38] : memref<2x16x4xf32, #tpu.memory_space<vmem>>, vector<1x16x4xf32>
    %49 = vector.shape_cast %48 : vector<1x16x4xf32> to vector<16x4xf32>
    %50 = vector.shape_cast %47 : vector<16x4xf32> to vector<1x16x4xf32>
    tpu.vector_store %arg2[%c0_36, %c0_37, %c0_38], %50 {strides = array<i32>} : memref<2x16x4xf32, #tpu.memory_space<vmem>>, vector<1x16x4xf32>,
    %51 = vector.extract_strided_slice %44 {offsets = [1, 0, 0], sizes = [1, 4, 16], strides = [1, 1, 1]} : vector<2x4x16xf32> to vector<1x4x16xf32>
    %52 = vector.shape_cast %51 : vector<1x4x16xf32> to vector<4x16xf32>
    %53 = tpu.transpose %52, [1, 0] : vector<4x16xf32> -> vector<16x4xf32>
    %c1 = arith.constant 1 : index
    %c0_39 = arith.constant 0 : index
    %c0_40 = arith.constant 0 : index
    %54 = vector.load %arg2[%c1, %c0_39, %c0_40] : memref<2x16x4xf32, #tpu.memory_space<vmem>>, vector<1x16x4xf32>
    %55 = vector.shape_cast %54 : vector<1x16x4xf32> to vector<16x4xf32>
    %56 = vector.shape_cast %53 : vector<16x4xf32> to vector<1x16x4xf32>
    tpu.vector_store %arg2[%c1, %c0_39, %c0_40], %56 {strides = array<i32>} : memref<2x16x4xf32, #tpu.memory_space<vmem>>, vector<1x16x4xf32>,
    return
  }
}

</mosaic_0001>

<bundles_post_ra>
// kernel: _lambda_.1
= control target key start
LH: loop header
LB: loop body
LE: loop exit
PB: predicated region body
PF: predicated region fallthrough
CT: control target
= control target key end

     0   :  { %vm25_vm0 = vcmask 31744   ;;  %vm11_vm1 = vcmask 25600   ;;  %v2052_v2 = vmov 0.0   ;;  %vm48_vm2 = vcmask 1046528   ;;  %s2054_s17 = smov 12   ;;  %s2055_s22 = smov 8   ;;  %s2471_s0 = inlined_call_operand.vmem [shape: f32[2,16,4], index: 0, kind: input, shape index: {}]   ;;  %s2472_s1 = inlined_call_operand.vmem [shape: f32[56,16], index: 1, kind: input, shape index: {}]   ;;  %s2473_s2 = inlined_call_operand.vmem [shape: f32[2,16,4], index: 2, kind: output, shape index: {}]  }
   0x1   :  { %v22_v0 = vld [vmem:[%s2471_s0 + $0x8] sm:$0xff]  ;;  %v21_v1 = vld [vmem:[%s2471_s0] sm:$0xff]  ;;  %12 = vst.msk [vmem:[#allocation2 + $0x6] sm:$0x3] %vm11_vm1, %v2052_v2  ;;  %13 = vst.msk [vmem:[#allocation2 + $0x26] sm:$0x3] %vm11_vm1, %v2052_v2 }
   0x2   :  { %14 = vst.msk [vmem:[#allocation2 + $0x18] sm:$0x3] %vm11_vm1, %v2052_v2  ;;  %15 = vst.msk [vmem:[#allocation2 + $0x38] sm:$0x3] %vm11_vm1, %v2052_v2  ;;  %v23_v3 = vld [vmem:[%s2471_s0 + $0x10] sm:$0xff]  ;;  %v24_v4 = vld [vmem:[%s2471_s0 + $0x18] sm:$0xff] }
   0x3   :  { %27 = vst.msk [vmem:[#allocation2 + $0x10] sm:$0xff] %vm25_vm0, %v22_v0  ;;  %26 = vst.msk [vmem:[#allocation2 + $0x8] sm:$0xff] %vm25_vm0, %v21_v1  ;;  %s2053_s0 = smov 4   ;;  %v32_v14 = vld [vmem:[%s2472_s1 + $0x10] sm:$0xf]  ;;  %v31_v15 = vld [vmem:[%s2472_s1 + $0x8] sm:$0xff] }
   0x4   :  { %28 = vst.msk [vmem:[#allocation2 + $0x28] sm:$0xff] %vm25_vm0, %v23_v3  ;;  %29 = vst.msk [vmem:[#allocation2 + $0x30] sm:$0xff] %vm25_vm0, %v24_v4  ;;  %vm133_vm3 = vcmask 1043456   ;;  %v2119_v21 = vand.u32 4294901760, %v31_v15  ;;  %v30_v22 = vld [vmem:[%s2472_s1] sm:$0xff]  ;;  %vm104_vm4 = vcmask 1044480  }
   0x5   :  { %v220_v20 = vsel %vm133_vm3, %v32_v14, 0  ;;  %vm77_vm5 = vcmask 1045504   ;;  %v2129_v25 = vand.u32 4294901760, %v30_v22  ;;  %s2056_s25 = smov 16   ;;  %vm168_vm6 = vcmask 64512  }
   0x6   :  { %v2124_v23 = vand.u32 4294901760, %v220_v20  ;;  %v2127_v24 = vsub.f32 %v31_v15, %v2119_v21  ;;  %vm175_vm7 = vcmask 97280   ;;  %vm182_vm8 = vcmask 130048  }
   0x7   :  { %v2142_v31 = vsub.f32 %v30_v22, %v2129_v25  ;;  %vm195_vm9 = vcmask 1041408   ;;  %vm210_vm10 = vcmask 162816   ;;  %vm16_vm11 = vcmask 57344  }
   0x8   :  { %v2093_v5 = vld [vmem:[#allocation2] sm:$0xff]  ;;  %v2134_v27 = vsub.f32 %v220_v20, %v2124_v23  ;;  %v2139_v30 = vand.u32 4294901760, %v2127_v24  ;;  %1920 = vmatprep.subr.mxu0 %v2124_v23  ;;  %19 = vst.msk [vmem:[#allocation3 + $0x10] sm:$0x1] %vm16_vm11, %v2052_v2  ;;  %17 = vst.msk [vmem:[#allocation3 + $0x7] sm:$0x1] %vm16_vm11, %v2052_v2 }
   0x9   :  { %v49_v8 = vrot.slane %v2093_v5, 1  ;;  %v37_v19 = vld [vmem:[#allocation2 + $0x18] sm:$0x3]  ;;  %v2145_v32 = vld [vmem:[#allocation2 + $0x20] sm:$0xff]  ;;  %1921 = vmatpush3.msra.mxu0 %v2124_v23  ;;  %v2156_v36 = vand.u32 4294901760, %v2142_v31  ;;  %vm915_vm12 = vcmask 58368  }
   0xa   :  { %v2095_v6 = vld [vmem:[#allocation2 + $0x10] sm:$0xff]  ;;  %v2097_v7 = vld [vmem:[#allocation2 + $0x8] sm:$0xff]  ;;  %v108_v26 = vrot.slane %v37_v19, 3  ;;  %v2150_v34 = vand.u32 4294901760, %v2134_v27  ;;  %v367_v35 = vsub.f32 %v2127_v24, %v2139_v30  ;;  %1922 = vmatprep.subr.mxu0 %v2119_v21  ;;  %v54_v40 = vrot.slane %v2145_v32, 1 }
   0xb   :  { %v52_v9 = vrot.slane %v2095_v6, 1  ;;  %v105_v10 = vrot.slane %v2097_v7, 3  ;;  %v50_v11 = vrot.slane %v2097_v7, 1  ;;  %v78_v12 = vrot.slane %v2097_v7, 2  ;;  %v2147_v33 = vld [vmem:[#allocation2 + $0x28] sm:$0xff]  ;;  %1923 = vmatpush3.msra.mxu0 %v2119_v21  ;;  %v2169_v43 = vld [vmem:[#allocation2 + $0x30] sm:$0xff] }
   0xc   :  { %v79_v16 = vrot.slane %v2095_v6, 2  ;;  %v106_v18 = vrot.slane %v2095_v6, 3  ;;  %v134_v37 = vrot.slane %v2097_v7, 4  ;;  %v360_v38 = vsub.f32 %v2134_v27, %v2150_v34  ;;  %1924 = vmatprep.subr.mxu0 %v2129_v25  ;;  %v41_v59 = vld [vmem:[#allocation2 + $0x38] sm:$0x3] }
   0xd   :  { %63 = vrot.lane.b32.xlu1 %v52_v9, %s2053_s0  ;;  %115 = vrot.lane.b32.xlu0 %v105_v10, %s2054_s17  ;;  %v51_v13 = vsel %vm48_vm2, %v49_v8, %v50_v11  ;;  %v53_v17 = vsel %vm48_vm2, %v50_v11, %v52_v9  ;;  %v55_v41 = vrot.slane %v2147_v33, 1  ;;  %v135_v42 = vrot.slane %v2095_v6, 4  ;;  %18 = vst.msk [vmem:[#allocation3 + $0x1f] sm:$0x1] %vm16_vm11, %v2052_v2 }
   0xe   :  { %v107_v28 = vsel %vm104_vm4, %v105_v10, %v106_v18  ;;  %v80_v29 = vsel %vm77_vm5, %v78_v12, %v79_v16  ;;  %v109_v39 = vsel %vm104_vm4, %v106_v18, %v108_v26  ;;  %v361_v44 = vand.u32 4294901760, %v360_v38  ;;  %1925 = vmatpush3.msra.mxu0 %v2129_v25  ;;  %20 = vst.msk [vmem:[#allocation3 + $0x28] sm:$0x1] %vm16_vm11, %v2052_v2 }
   0xf   :  { %v374_v45 = vsub.f32 %v2142_v31, %v2156_v36  ;;  %v368_v46 = vand.u32 4294901760, %v367_v35  ;;  %v56_v47 = vsel %vm48_vm2, %v54_v40, %v55_v41  ;;  %v136_v48 = vsel %vm133_vm3, %v134_v37, %v135_v42  ;;  %1944 = vmatprep.subr.mxu0 %v2134_v27 }
  0x10   :  { %v137_v49 = vrot.slane %v37_v19, 4  ;;  %v57_v50 = vrot.slane %v2169_v43, 1  ;;  %1932 = vmatprep.subr.mxu1 %v361_v44  ;;  %v81_v54 = vrot.slane %v2147_v33, 2  ;;  %v82_v55 = vrot.slane %v2169_v43, 2 }
  0x11   :  { %84 = vrot.lane.b32.xlu1 %v78_v12, %s2055_s22  ;;  %59 = vrot.lane.b32.xlu0 %v51_v13, %s2053_s0  ;;  %v375_v51 = vand.u32 4294901760, %v374_v45  ;;  %v110_v57 = vrot.slane %v2147_v33, 3  ;;  %v111_v58 = vrot.slane %v2169_v43, 3  ;;  %v113_v61 = vrot.slane %v41_v59, 3 }
  0x12   :  { %1933 = vmatpush3.msra.mxu1 %v361_v44  ;;  %v138_v52 = vsel %vm133_vm3, %v135_v42, %v137_v49  ;;  %v58_v53 = vsel %vm48_vm2, %v55_v41, %v57_v50  ;;  %v83_v56 = vsel %vm77_vm5, %v81_v54, %v82_v55  ;;  %v139_v62 = vrot.slane %v2147_v33, 4 }
  0x13   :  { %1934 = vmatprep.subr.mxu1 %v368_v46  ;;  %v112_v60 = vsel %vm104_vm4, %v110_v57, %v111_v58  ;;  %v114_v63 = vsel %vm104_vm4, %v111_v58, %v113_v61  ;;  %v140_v0 = vrot.slane %v2169_v43, 4  ;;  %v142_v1 = vrot.slane %v41_v59, 4 }
  0x14   :  { %1935 = vmatpush3.msra.mxu1 %v368_v46  ;;  %vm1044_vm13 = vcmask 1041409   ;;  %vm1046_vm14 = vcmask 1042434   ;;  %vm1048_vm15 = vcmask 1043459   ;;  %vm1050_vm1 = vcmask 1044484  }
  0x15   :  { %88 = vrot.lane.b32.xlu1 %v79_v16, %s2055_s22  ;;  %61 = vrot.lane.b32.xlu0 %v53_v17, %s2053_s0  ;;  %v143_v3 = vsel %vm133_vm3, %v140_v0, %v142_v1  ;;  %v141_v4 = vsel %vm133_vm3, %v139_v62, %v140_v0  ;;  %vm1052_vm2 = vcmask 1045509   ;;  %vm1054_vm3 = vcmask 1046534  }
  0x16   :  { %1936 = vmatprep.subr.mxu1 %v375_v51  ;;  %vm1056_vm4 = vcmask 1047559  }
  0x17   :  { %1937 = vmatpush3.msra.mxu1 %v375_v51 }
  0x18   :  { %1956 = vmatprep.subr.mxu1 %v2124_v23 }
  0x19   :  { %117 = vrot.lane.b32.xlu1 %v107_v28, %s2054_s17  ;;  %86 = vrot.lane.b32.xlu0 %v80_v29, %s2055_s22 }
  0x1d   :  { %144 = vrot.lane.b32.xlu1 %v134_v37, %s2056_s25  ;;  %119 = vrot.lane.b32.xlu0 %v109_v39, %s2054_s17 }
  0x21   :  { %65 = vrot.lane.b32.xlu1 %v56_v47, %s2053_s0  ;;  %146 = vrot.lane.b32.xlu0 %v136_v48, %s2056_s25 }
  0x25   :  { %148 = vrot.lane.b32.xlu1 %v138_v52, %s2056_s25  ;;  %67 = vrot.lane.b32.xlu0 %v58_v53, %s2053_s0 }
  0x29   :  { %90 = vrot.lane.b32.xlu1 %v81_v54, %s2055_s22  ;;  %69 = vrot.lane.b32.xlu0 %v57_v50, %s2053_s0 }
  0x2d   :  { %94 = vrot.lane.b32.xlu1 %v82_v55, %s2055_s22  ;;  %92 = vrot.lane.b32.xlu0 %v83_v56, %s2055_s22 }
  0x31   :  { %123 = vrot.lane.b32.xlu1 %v112_v60, %s2054_s17  ;;  %121 = vrot.lane.b32.xlu0 %v110_v57, %s2054_s17 }
  0x35   :  { %150 = vrot.lane.b32.xlu1 %v139_v62, %s2056_s25  ;;  %125 = vrot.lane.b32.xlu0 %v114_v63, %s2054_s17 }
  0x39   :  { %154 = vrot.lane.b32.xlu1 %v143_v3, %s2056_s25  ;;  %152 = vrot.lane.b32.xlu0 %v141_v4, %s2056_s25 }
  0x7f   :  { %v64_v8 = vpop.permute.xlu1 %63  ;;  %v116_v9 = vpop.permute.xlu0 %115 }
  0x80   :  { %v164_v38 = vsel %vm25_vm0, %v2095_v6, %v64_v8 }
  0x83   :  { %v85_v10 = vpop.permute.xlu1 %84  ;;  %v60_v11 = vpop.permute.xlu0 %59 }
  0x84   :  { %v162_v14 = vsel %vm25_vm0, %v2093_v5, %v60_v11 }
  0x85   :  { %v169_v17 = vsel %vm168_vm6, %v162_v14, %v85_v10 }
  0x86   :  { %v176_v26 = vsel %vm175_vm7, %v169_v17, %v116_v9 }
  0x87   :  { %v89_v12 = vpop.permute.xlu1 %88  ;;  %v62_v13 = vpop.permute.xlu0 %61 }
  0x88   :  { %v163_v18 = vsel %vm25_vm0, %v2097_v7, %v62_v13  ;;  %v171_v40 = vsel %vm168_vm6, %v164_v38, %v89_v12 }
  0x8b   :  { %v118_v15 = vpop.permute.xlu1 %117  ;;  %v87_v16 = vpop.permute.xlu0 %86 }
  0x8c   :  { %v170_v22 = vsel %vm168_vm6, %v163_v18, %v87_v16 }
  0x8d   :  { %v177_v5 = vsel %vm175_vm7, %v170_v22, %v118_v15 }
  0x8f   :  { %v145_v19 = vpop.permute.xlu1 %144  ;;  %v120_v20 = vpop.permute.xlu0 %119 }
  0x90   :  { %v183_v28 = vsel %vm182_vm8, %v176_v26, %v145_v19  ;;  %v178_v41 = vsel %vm175_vm7, %v171_v40, %v120_v20 }
  0x91   :  { %v196_v7 = vrot.slane %v183_v28, 6 }
  0x93   :  { %v66_v29 = vpop.permute.xlu1 %65  ;;  %v147_v35 = vpop.permute.xlu0 %146 }
  0x94   :  { %v184_v37 = vsel %vm182_vm8, %v177_v5, %v147_v35  ;;  %v165_v3 = vsel %vm25_vm0, %v2145_v32, %v66_v29 }
  0x95   :  { %v197_v39 = vrot.slane %v184_v37, 6 }
  0x97   :  { %v198_v42 = vsel %vm195_vm9, %v196_v7, %v197_v39  ;;  %v149_v44 = vpop.permute.xlu1 %148  ;;  %v68_v45 = vpop.permute.xlu0 %67 }
  0x98   :  { %v211_v46 = vsel %vm210_vm10, %v198_v42, 0  ;;  %v185_v47 = vsel %vm182_vm8, %v178_v41, %v149_v44  ;;  %v166_v10 = vsel %vm25_vm0, %v2147_v33, %v68_v45 }
  0x99   :  { %v199_v48 = vrot.slane %v185_v47, 6  ;;  %v2226_v49 = vand.u32 4294901760, %v211_v46 }
  0x9b   :  { %v200_v6 = vsel %vm195_vm9, %v197_v39, %v199_v48  ;;  %v91_v50 = vpop.permute.xlu1 %90  ;;  %1938 = vmatprep.mubr.f32.mxu1 %v2226_v49  ;;  %v70_v51 = vpop.permute.xlu0 %69  ;;  %v2231_v52 = vsub.f32 %v211_v46, %v2226_v49 }
  0x9c   :  { %v213_v53 = vsel %vm210_vm10, %v200_v6, 0  ;;  %v172_v9 = vsel %vm168_vm6, %v165_v3, %v91_v50  ;;  %v167_v11 = vsel %vm25_vm0, %v2169_v43, %v70_v51 }
  0x9d   :  { %v2234_v54 = vand.u32 4294901760, %v213_v53  ;;  %v292_v55 = vand.u32 4294901760, %v2231_v52 }
  0x9f   :  { %v95_v56 = vpop.permute.xlu1 %94  ;;  %1939 = vmatmul.mubr.f32.vlgmr.msra.gmra.mxu1 %v2234_v54  ;;  %v93_v57 = vpop.permute.xlu0 %92  ;;  %v293_v58 = vsub.f32 %v2231_v52, %v292_v55  ;;  %v2240_v59 = vsub.f32 %v213_v53, %v2234_v54 }
  0xa0   :  { %1957 = vmatpush3.msra.mxu1 %v2124_v23  ;;  %v174_v13 = vsel %vm168_vm6, %v167_v11, %v95_v56  ;;  %v173_v32 = vsel %vm168_vm6, %v166_v10, %v93_v57  ;;  %v835_v56 = vlaneseq }
  0xa1   :  { %v294_v60 = vand.u32 4294901760, %v293_v58  ;;  %v302_v61 = vand.u32 4294901760, %v2240_v59  ;;  %1958 = vmatprep.subr.mxu1 %v2119_v21 }
  0xa2   :  { %1959 = vmatpush3.msra.mxu1 %v2119_v21 }
  0xa3   :  { %v124_v62 = vpop.permute.xlu1 %123  ;;  %1926 = vmatprep.mubr.f32.mxu0 %v294_v60  ;;  %v122_v63 = vpop.permute.xlu0 %121  ;;  %v303_v0 = vsub.f32 %v2240_v59, %v302_v61  ;;  %1960 = vmatprep.subr.mxu1 %v2129_v25 }
  0xa4   :  { %1961 = vmatpush3.msra.mxu1 %v2129_v25  ;;  %v179_v12 = vsel %vm175_vm7, %v172_v9, %v122_v63 }
  0xa5   :  { %v304_v1 = vand.u32 4294901760, %v303_v0  ;;  %1980 = vmatprep.subr.mxu1 %v2124_v23  ;;  %v836_v0 = vshrl.u32 %v835_v56, 7 }
  0xa7   :  { %v151_v4 = vpop.permute.xlu1 %150  ;;  %1927 = vmatmul.mubr.f32.vlgmr.msra.gmra.mxu0 %v304_v1  ;;  %v126_v8 = vpop.permute.xlu0 %125 }
  0xa8   :  { %1945 = vmatpush3.msra.mxu0 %v2134_v27  ;;  %v186_v14 = vsel %vm182_vm8, %v179_v12, %v151_v4  ;;  %v180_v27 = vsel %vm175_vm7, %v173_v32, %v124_v62  ;;  %v181_v15 = vsel %vm175_vm7, %v174_v13, %v126_v8  ;;  %vm1121_vm7 = vcmask 1040384  }
  0xa9   :  { %1946 = vmatprep.subr.mxu0 %v2127_v24  ;;  %v201_v18 = vrot.slane %v186_v14, 6 }
  0xaa   :  { %1947 = vmatpush3.msra.mxu0 %v2127_v24 }
  0xab   :  { %v155_v33 = vpop.permute.xlu1 %154  ;;  %v153_v16 = vpop.permute.xlu0 %152  ;;  %1948 = vmatprep.subr.mxu0 %v2142_v31 }
  0xac   :  { %v188_v43 = vsel %vm182_vm8, %v181_v15, %v155_v33  ;;  %v187_v17 = vsel %vm182_vm8, %v180_v27, %v153_v16  ;;  %1949 = vmatpush3.msra.mxu0 %v2142_v31 }
  0xad   :  { %v204_v19 = vrot.slane %v188_v43, 6  ;;  %v202_v20 = vrot.slane %v187_v17, 6  ;;  %1968 = vmatprep.subr.mxu0 %v2150_v34 }
  0xaf   :  { %v203_v24 = vsel %vm195_vm9, %v201_v18, %v202_v20  ;;  %v205_v22 = vsel %vm195_vm9, %v202_v20, %v204_v19  ;;  %vm1132_vm9 = vcmask 195584  }
  0xb0   :  { %v215_v26 = vsel %vm210_vm10, %v203_v24, 0  ;;  %v217_v28 = vsel %vm210_vm10, %v205_v22, 0 }
  0xb1   :  { %v310_v29 = vand.u32 4294901760, %v215_v26  ;;  %v320_v5 = vand.u32 4294901760, %v217_v28 }
  0xb3   :  { %1941 = vmatprep.mubr.f32.mxu1 %v310_v29  ;;  %v311_v35 = vsub.f32 %v215_v26, %v310_v29  ;;  %v321_v37 = vsub.f32 %v217_v28, %v320_v5 }
  0xb4   :  { %1942 = vmatmul.mubr.f32.gmra.mxu1 %v320_v5 }
  0xb5   :  { %1962 = vmatprep.mubr.f32.mxu1 %v292_v55  ;;  %v312_v31 = vand.u32 4294901760, %v311_v35  ;;  %v322_v38 = vand.u32 4294901760, %v321_v37 }
  0xb7   :  { %v313_v7 = vsub.f32 %v311_v35, %v312_v31  ;;  %v323_v39 = vsub.f32 %v321_v37, %v322_v38 }
  0xb8   :  { %1963 = vmatmul.mubr.f32.vlgmr.msra.gmra.mxu1 %v302_v61 }
  0xb9   :  { %1965 = vmatprep.mubr.f32.mxu1 %v312_v31  ;;  %v314_v40 = vand.u32 4294901760, %v313_v7  ;;  %1981 = vmatpush3.msra.mxu1 %v2124_v23  ;;  %v324_v41 = vand.u32 4294901760, %v323_v39 }
  0xba   :  { %1982 = vmatprep.subr.mxu1 %v2119_v21 }
  0xbb   :  { %1929 = vmatprep.mubr.f32.mxu0 %v314_v40  ;;  %1983 = vmatpush3.msra.mxu1 %v2119_v21 }
  0xbc   :  { %1930 = vmatmul.mubr.f32.gmra.mxu0 %v324_v41  ;;  %1966 = vmatmul.mubr.f32.gmra.mxu1 %v322_v38 }
  0xbd   :  { %1950 = vmatprep.mubr.f32.mxu0 %v2231_v52  ;;  %1986 = vmatprep.mubr.f32.mxu1 %v2226_v49 }
  0xbe   :  { %1984 = vmatprep.subr.mxu1 %v2129_v25 }
  0xbf   :  { %1985 = vmatpush3.msra.mxu1 %v2129_v25 }
  0xc0   :  { %1951 = vmatmul.mubr.f32.vlgmr.msra.gmra.mxu0 %v2240_v59  ;;  %1987 = vmatmul.mubr.f32.vlgmr.msra.gmra.mxu1 %v2234_v54 }
  0xc1   :  { %1969 = vmatpush3.msra.mxu0 %v2150_v34  ;;  %1953 = vmatprep.mubr.f32.mxu0 %v311_v35 }
  0xc2   :  { %1989 = vmatprep.mubr.f32.mxu1 %v310_v29  ;;  %1970 = vmatprep.subr.mxu0 %v2139_v30 }
  0xc3   :  { %1971 = vmatpush3.msra.mxu0 %v2139_v30 }
  0xc4   :  { %1954 = vmatmul.mubr.f32.gmra.mxu0 %v321_v37  ;;  %1990 = vmatmul.mubr.f32.gmra.mxu1 %v320_v5 }
  0xc5   :  { %1972 = vmatprep.subr.mxu0 %v2156_v36  ;;  %1974 = vmatprep.mubr.f32.mxu0 %v2226_v49 }
  0xc6   :  { %1973 = vmatpush3.msra.mxu0 %v2156_v36  ;;  %v1844_v36 = vld [vmem:[%s2472_s1 + $0x14] ss:$0 sm:$0xff] }
  0xc8   :  { %1975 = vmatmul.mubr.f32.vlgmr.msra.gmra.mxu0 %v2234_v54  ;;  %v2057_v54 = vmov 1983009808  }
  0xc9   :  { %1977 = vmatprep.mubr.f32.mxu0 %v310_v29  ;;  %v833_v55 = vunpack.c.l.s4 %v2057_v54 }
  0xcb   :  { %v834_v63 = vunpack.c.0.s8 %v833_v55 }
  0xcc   :  { %1978 = vmatmul.mubr.f32.gmra.mxu0 %v320_v5 }
  0xcd   :  { %v2298_v13 = vsub.s32 %v834_v63, %v836_v0 }
 0x15f   :  { %v1940_v21 = vpop.f32.mrf.mxu1 }
 0x161   :  { %v412_v23 = vpop.f32.mrf.mxu1 }
 0x167   :  { %v1928_v30 = vpop.f32.mrf.mxu0 }
 0x168   :  { %v307_v47 = vadd.f32 %v1928_v30, %v1844_v36 }
 0x169   :  { %v296_v44 = vpop.f32.mrf.mxu0 }
 0x16a   :  { %v297_v49 = vadd.f32 %v1844_v36, %v296_v44  ;;  %v419_v51 = vadd.f32 %v1940_v21, %v307_v47 }
 0x16c   :  { %v413_v53 = vadd.f32 %v412_v23, %v297_v49 }
 0x174   :  { %v1943_v25 = vpop.f32.mrf.mxu1 }
 0x176   :  { %v424_v34 = vpop.f32.mrf.mxu1 }
 0x178   :  { %v1964_v42 = vpop.f32.mrf.mxu1 }
 0x17a   :  { %v605_v45 = vpop.f32.mrf.mxu1 }
 0x17c   :  { %v1931_v46 = vpop.f32.mrf.mxu0  ;;  %v1967_v6 = vpop.f32.mrf.mxu1 }
 0x17d   :  { %v327_v60 = vadd.f32 %v1931_v46, %v1844_v36 }
 0x17e   :  { %v316_v48 = vpop.f32.mrf.mxu0  ;;  %v621_v57 = vpop.f32.mrf.mxu1 }
 0x17f   :  { %v317_v1 = vadd.f32 %v1844_v36, %v316_v48  ;;  %v431_v10 = vadd.f32 %v1943_v25, %v327_v60 }
 0x180   :  { %v1952_v50 = vpop.f32.mrf.mxu0  ;;  %v1988_v3 = vpop.f32.mrf.mxu1 }
 0x181   :  { %v516_v52 = vadd.f32 %v1952_v50, %v419_v51  ;;  %v425_v15 = vadd.f32 %v424_v34, %v317_v1 }
 0x182   :  { %v508_v2 = vpop.f32.mrf.mxu0  ;;  %v801_v14 = vpop.f32.mrf.mxu1 }
 0x183   :  { %v509_v59 = vadd.f32 %v508_v2, %v413_v53  ;;  %v614_v62 = vadd.f32 %v1964_v42, %v516_v52 }
 0x184   :  { %v1955_v58 = vpop.f32.mrf.mxu0  ;;  %v1991_v30 = vpop.f32.mrf.mxu1 }
 0x185   :  { %v606_v9 = vadd.f32 %v605_v45, %v509_v59  ;;  %v530_v27 = vadd.f32 %v1955_v58, %v431_v10 }
 0x186   :  { %v522_v61 = vpop.f32.mrf.mxu0 }
 0x187   :  { %v523_v43 = vadd.f32 %v522_v61, %v425_v15  ;;  %v630_v24 = vadd.f32 %v1967_v6, %v530_v27 }
 0x188   :  { %v1976_v4 = vpop.f32.mrf.mxu0 }
 0x189   :  { %v716_v8 = vadd.f32 %v1976_v4, %v614_v62  ;;  %v622_v31 = vadd.f32 %v621_v57, %v523_v43  ;;  %v813_v62 = vpop.f32.mrf.mxu1 }
 0x18a   :  { %v709_v11 = vpop.f32.mrf.mxu0 }
 0x18b   :  { %v808_v12 = vadd.f32 %v1988_v3, %v716_v8  ;;  %v710_v32 = vadd.f32 %v709_v11, %v606_v9 }
 0x18c   :  { %v1979_v20 = vpop.f32.mrf.mxu0 }
 0x18d   :  { %v824_v33 = vmax.f32 %v808_v12, 0.0  ;;  %v802_v16 = vadd.f32 %v801_v14, %v710_v32  ;;  %v728_v37 = vadd.f32 %v1979_v20, %v630_v24 }
 0x18e   :  { %v721_v45 = vpop.f32.mrf.mxu0 }
 0x18f   :  { %v848_v17 = vcombine.high %v824_v33, %v824_v33  ;;  %v855_v18 = vrot.slane %v824_v33, %v2298_v13  ;;  %v823_v19 = vmax.f32 %v802_v16, 0.0  ;;  %v820_v49 = vadd.f32 %v1991_v30, %v728_v37 }
 0x190   :  { %v722_v55 = vadd.f32 %v721_v45, %v622_v31 }
 0x191   :  { %v862_v22 = vrot.slane %v848_v17, %v2298_v13  ;;  %v863_v26 = vcombine.high %v855_v18, %v855_v18  ;;  %v944_v28 = vsel %vm915_vm12, %v855_v18, -inf  ;;  %v831_v29 = vcombine.high %v823_v19, %v823_v19 }
 0x192   :  { %v945_v5 = vrot.slane %v944_v28, 4  ;;  %v838_v35 = vrot.slane %v823_v19, %v2298_v13  ;;  %v826_v61 = vmax.f32 %v820_v49, 0.0  ;;  %v814_v10 = vadd.f32 %v813_v62, %v722_v55 }
 0x193   :  { %v864_v38 = vcombine.high %v862_v22, %v862_v22  ;;  %v951_v7 = vsel %vm915_vm12, %v863_v26, -inf  ;;  %v958_v39 = vsel %vm915_vm12, %v862_v22, -inf  ;;  %v845_v40 = vrot.slane %v831_v29, %v2298_v13 }
 0x194   :  { %v946_v41 = vmax.f32 %v944_v28, %v945_v5  ;;  %v952_v21 = vrot.slane %v951_v7, 4  ;;  %v959_v23 = vrot.slane %v958_v39, 4  ;;  %v846_v25 = vcombine.high %v838_v35, %v838_v35 }
 0x195   :  { %v965_v34 = vsel %vm915_vm12, %v864_v38, -inf  ;;  %v847_v42 = vcombine.high %v845_v40, %v845_v40  ;;  %v916_v36 = vsel %vm915_vm12, %v838_v35, -inf  ;;  %v930_v44 = vsel %vm915_vm12, %v845_v40, -inf }
 0x196   :  { %v953_v46 = vmax.f32 %v951_v7, %v952_v21  ;;  %v960_v47 = vmax.f32 %v958_v39, %v959_v23  ;;  %v966_v48 = vrot.slane %v965_v34, 4  ;;  %v917_v6 = vrot.slane %v916_v36, 4 }
 0x197   :  { %v923_v50 = vsel %vm915_vm12, %v846_v25, -inf  ;;  %v931_v51 = vrot.slane %v930_v44, 4  ;;  %v937_v2 = vsel %vm915_vm12, %v847_v42, -inf  ;;  %v947_v52 = vrot.slane %v946_v41, 2 }
 0x198   :  { %v954_v53 = vrot.slane %v953_v46, 2  ;;  %v967_v54 = vmax.f32 %v965_v34, %v966_v48  ;;  %v918_v56 = vmax.f32 %v916_v36, %v917_v6  ;;  %v924_v57 = vrot.slane %v923_v50, 4 }
 0x199   :  { %v932_v58 = vmax.f32 %v930_v44, %v931_v51  ;;  %v938_v59 = vrot.slane %v937_v2, 4  ;;  %v961_v60 = vrot.slane %v960_v47, 2  ;;  %v948_v4 = vmax.f32 %v946_v41, %v947_v52 }
 0x19a   :  { %v919_v63 = vrot.slane %v918_v56, 2  ;;  %v925_v0 = vmax.f32 %v923_v50, %v924_v57  ;;  %v955_v8 = vmax.f32 %v953_v46, %v954_v53  ;;  %v968_v9 = vrot.slane %v967_v54, 2 }
 0x19b   :  { %v933_v1 = vrot.slane %v932_v58, 2  ;;  %v939_v3 = vmax.f32 %v937_v2, %v938_v59  ;;  %v962_v27 = vmax.f32 %v960_v47, %v961_v60  ;;  %v882_v15 = vcombine.high %v826_v61, %v826_v61 }
 0x19c   :  { %v920_v11 = vmax.f32 %v918_v56, %v919_v63  ;;  %v926_v12 = vrot.slane %v925_v0, 2  ;;  %v949_v18 = vrot.slane %v948_v4, 1  ;;  %v889_v19 = vrot.slane %v826_v61, %v2298_v13 }
 0x19d   :  { %v934_v32 = vmax.f32 %v932_v58, %v933_v1  ;;  %v940_v14 = vrot.slane %v939_v3, 2  ;;  %v896_v20 = vrot.slane %v882_v15, %v2298_v13  ;;  %v825_v24 = vmax.f32 %v814_v10, 0.0 }
 0x19e   :  { %v921_v33 = vrot.slane %v920_v11, 1  ;;  %v927_v16 = vmax.f32 %v925_v0, %v926_v12  ;;  %v956_v22 = vrot.slane %v955_v8, 1  ;;  %v969_v26 = vmax.f32 %v967_v54, %v968_v9 }
 0x19f   :  { %v935_v43 = vrot.slane %v934_v32, 1  ;;  %v941_v17 = vmax.f32 %v939_v3, %v940_v14  ;;  %v897_v35 = vcombine.high %v889_v19, %v889_v19  ;;  %v898_v37 = vcombine.high %v896_v20, %v896_v20 }
 0x1a0   :  { %v928_v28 = vrot.slane %v927_v16, 1  ;;  %v1000_v31 = vsel %vm915_vm12, %v889_v19, -inf  ;;  %v963_v38 = vrot.slane %v962_v27, 1  ;;  %v922_v7 = vmax.f32 %v920_v11, %v921_v33  ;;  %v1075_v33 = vld [vmem:[#allocation3 + $0x10] sm:$0x1] }
 0x1a1   :  { %v942_v29 = vrot.slane %v941_v17, 1  ;;  %v936_v5 = vmax.f32 %v934_v32, %v935_v43  ;;  %v1007_v41 = vsel %vm915_vm12, %v897_v35, -inf  ;;  %v1014_v21 = vsel %vm915_vm12, %v896_v20, -inf }
 0x1a2   :  { %v929_v39 = vmax.f32 %v927_v16, %v928_v28  ;;  %v865_v23 = vcombine.high %v825_v24, %v825_v24  ;;  %v872_v25 = vrot.slane %v825_v24, %v2298_v13  ;;  %v950_v30 = vmax.f32 %v948_v4, %v949_v18 }
 0x1a3   :  { %v943_v40 = vmax.f32 %v941_v17, %v942_v29  ;;  %v970_v34 = vrot.slane %v969_v26, 1  ;;  %v1001_v36 = vrot.slane %v1000_v31, 4  ;;  %v1021_v45 = vsel %vm915_vm12, %v898_v37, -inf }
 0x1a4   :  { %v1045_v42 = vsel %vm1044_vm13, %v929_v39, %v922_v7  ;;  %v879_v46 = vrot.slane %v865_v23, %v2298_v13  ;;  %v880_v47 = vcombine.high %v872_v25, %v872_v25  ;;  %v957_v48 = vmax.f32 %v955_v8, %v956_v22 }
 0x1a5   :  { %v1047_v44 = vsel %vm1046_vm14, %v936_v5, %v1045_v42  ;;  %v1008_v6 = vrot.slane %v1007_v41, 4  ;;  %v1015_v50 = vrot.slane %v1014_v21, 4  ;;  %v964_v51 = vmax.f32 %v962_v27, %v963_v38 }
 0x1a6   :  { %v1049_v49 = vsel %vm1048_vm15, %v943_v40, %v1047_v44  ;;  %v972_v52 = vsel %vm915_vm12, %v872_v25, -inf  ;;  %v971_v53 = vmax.f32 %v969_v26, %v970_v34  ;;  %v1002_v55 = vmax.f32 %v1000_v31, %v1001_v36 }
 0x1a7   :  { %v1051_v2 = vsel %vm1050_vm1, %v950_v30, %v1049_v49  ;;  %v1022_v56 = vrot.slane %v1021_v45, 4  ;;  %v881_v58 = vcombine.high %v879_v46, %v879_v46  ;;  %v973_v59 = vrot.slane %v972_v52, 4 }
 0x1a8   :  { %v1053_v54 = vsel %vm1052_vm2, %v957_v48, %v1051_v2  ;;  %v979_v60 = vsel %vm915_vm12, %v880_v47, -inf  ;;  %v1009_v62 = vmax.f32 %v1007_v41, %v1008_v6  ;;  %v1016_v63 = vmax.f32 %v1014_v21, %v1015_v50  ;;  %v1070_v50 = vld [vmem:[%s2472_s1 + $0x20] sm:$0xff] }
 0x1a9   :  { %v1055_v57 = vsel %vm1054_vm3, %v964_v51, %v1053_v54  ;;  %v974_v0 = vmax.f32 %v972_v52, %v973_v59  ;;  %v980_v1 = vrot.slane %v979_v60, 4  ;;  %v986_v3 = vsel %vm915_vm12, %v879_v46, -inf }
 0x1aa   :  { %v1057_v61 = vsel %vm1056_vm4, %v971_v53, %v1055_v57  ;;  %v1023_v4 = vmax.f32 %v1021_v45, %v1022_v56  ;;  %v987_v8 = vrot.slane %v986_v3, 4  ;;  %v1003_v9 = vrot.slane %v1002_v55, 2  ;;  %v1071_v45 = vld [vmem:[%s2472_s1 + $0x28] sm:$0xff]  ;;  %v1069_v56 = vld [vmem:[%s2472_s1 + $0x18] sm:$0xff] }
 0x1ab   :  { %1067 = vst.msk [vmem:[#allocation3 + $0x8] sm:$0xff] %vm168_vm6, %v1057_v61  ;;  %v975_v10 = vrot.slane %v974_v0, 2  ;;  %v981_v11 = vmax.f32 %v979_v60, %v980_v1  ;;  %v993_v12 = vsel %vm915_vm12, %v881_v58, -inf  ;;  %v1010_v32 = vrot.slane %v1009_v62, 2 }
 0x1ac   :  { %v1017_v14 = vrot.slane %v1016_v63, 2  ;;  %v988_v27 = vmax.f32 %v986_v3, %v987_v8  ;;  %v994_v15 = vrot.slane %v993_v12, 4  ;;  %v1024_v17 = vrot.slane %v1023_v4, 2 }
 0x1ad   :  { %v976_v16 = vmax.f32 %v974_v0, %v975_v10  ;;  %v982_v43 = vrot.slane %v981_v11, 2  ;;  %v1004_v20 = vmax.f32 %v1002_v55, %v1003_v9  ;;  %v1092_v26 = vrot.slane %v1075_v33, 2 }
 0x1ae   :  { %v989_v18 = vrot.slane %v988_v27, 2  ;;  %v995_v19 = vmax.f32 %v993_v12, %v994_v15  ;;  %v1011_v28 = vmax.f32 %v1009_v62, %v1010_v32  ;;  %v1018_v29 = vmax.f32 %v1016_v63, %v1017_v14  ;;  %v1078_v14 = vld [vmem:[#allocation3 + $0x28] sm:$0x1] }
 0x1af   :  { %v977_v24 = vrot.slane %v976_v16, 1  ;;  %v983_v22 = vmax.f32 %v981_v11, %v982_v43  ;;  %v1025_v39 = vmax.f32 %v1023_v4, %v1024_v17  ;;  %v1005_v21 = vrot.slane %v1004_v20, 1 }
 0x1b0   :  { %v990_v5 = vmax.f32 %v988_v27, %v989_v18  ;;  %v996_v35 = vrot.slane %v995_v19, 2  ;;  %v1012_v34 = vrot.slane %v1011_v28, 1  ;;  %v1019_v42 = vrot.slane %v1018_v29, 1  ;;  %v1073_v18 = vld [vmem:[#allocation3] sm:$0xff] }
 0x1b1   :  { %v984_v31 = vrot.slane %v983_v22, 1  ;;  %v978_v23 = vmax.f32 %v976_v16, %v977_v24  ;;  %v2343_v47 = vand.u32 4294901760, %v1071_v45  ;;  %v1026_v48 = vrot.slane %v1025_v39, 1 }
 0x1b2   :  { %v2332_v37 = vld [vmem:[#allocation3 + $0x8] sm:$0xff]  ;;  %v991_v40 = vrot.slane %v990_v5, 1  ;;  %v997_v41 = vmax.f32 %v995_v19, %v996_v35  ;;  %v1006_v51 = vmax.f32 %v1004_v20, %v1005_v21  ;;  %v2353_v52 = vand.u32 4294901760, %v1070_v50 }
 0x1b3   :  { %v1081_v38 = vrot.slane %v2332_v37, 1  ;;  %v1091_v7 = vrot.slane %v2332_v37, 2  ;;  %v985_v25 = vmax.f32 %v983_v22, %v984_v31  ;;  %v2351_v2 = vsub.f32 %v1071_v45, %v2343_v47  ;;  %1992 = vmatprep.subr.mxu0 %v2343_v47 }
 0x1b4   :  { %v992_v36 = vmax.f32 %v990_v5, %v991_v40  ;;  %v998_v44 = vrot.slane %v997_v41, 1  ;;  %v1013_v53 = vmax.f32 %v1011_v28, %v1012_v34  ;;  %v1020_v54 = vmax.f32 %v1018_v29, %v1019_v42  ;;  %1993 = vmatpush3.msra.mxu0 %v2343_v47  ;;  %v1076_v40 = vld [vmem:[#allocation3 + $0x18] sm:$0xff] }
 0x1b5   :  { %1083 = vrot.lane.b32.xlu0 %v1081_v38, %s2055_s22  ;;  %v1093_v30 = vsel %vm77_vm5, %v1091_v7, %v1092_v26  ;;  %v1058_v46 = vsel %vm1044_vm13, %v985_v25, %v978_v23  ;;  %v2363_v58 = vand.u32 4294901760, %v2351_v2  ;;  %v2366_v59 = vsub.f32 %v1070_v50, %v2353_v52  ;;  %1994 = vmatprep.subr.mxu0 %v2353_v52 }
 0x1b6   :  { %1099 = vrot.lane.b32.xlu1 %v1093_v30, %s2056_s25  ;;  %v999_v49 = vmax.f32 %v997_v41, %v998_v44  ;;  %v1059_v6 = vsel %vm1046_vm14, %v992_v36, %v1058_v46  ;;  %v2368_v60 = vand.u32 4294901760, %v1069_v56  ;;  %v1027_v61 = vmax.f32 %v1025_v39, %v1026_v48  ;;  %1995 = vmatpush3.msra.mxu0 %v2353_v52 }
 0x1b7   :  { %v1255_v0 = vsub.f32 %v2351_v2, %v2363_v58  ;;  %v2377_v1 = vand.u32 4294901760, %v2366_v59  ;;  %v1095_v16 = vrot.slane %v1078_v14, 2 }
 0x1b8   :  { %v1060_v55 = vsel %vm1048_vm15, %v999_v49, %v1059_v6  ;;  %v2380_v3 = vsub.f32 %v1069_v56, %v2368_v60  ;;  %1996 = vmatprep.subr.mxu0 %v2368_v60 }
 0x1b9   :  { %1097 = vrot.lane.b32.xlu0 %v1091_v7, %s2056_s25  ;;  %v1061_v57 = vsel %vm1050_vm1, %v1006_v51, %v1060_v55  ;;  %1997 = vmatpush3.msra.mxu0 %v2368_v60  ;;  %v1256_v8 = vand.u32 4294901760, %v1255_v0  ;;  %v1262_v9 = vsub.f32 %v2366_v59, %v2377_v1 }
 0x1ba   :  { %v1062_v62 = vsel %vm1052_vm2, %v1013_v53, %v1061_v57  ;;  %v2389_v10 = vand.u32 4294901760, %v2380_v3  ;;  %2010 = vmatprep.subr.mxu0 %v2351_v2 }
 0x1bb   :  { %v1063_v63 = vsel %vm1054_vm3, %v1020_v54, %v1062_v62  ;;  %2001 = vmatprep.subr.mxu1 %v1256_v8  ;;  %v1263_v11 = vand.u32 4294901760, %v1262_v9 }
 0x1bc   :  { %v1064_v4 = vsel %vm1056_vm4, %v1027_v61, %v1063_v63  ;;  %v1269_v12 = vsub.f32 %v2380_v3, %v2389_v10  ;;  %2002 = vmatpush3.msra.mxu1 %v1256_v8 }
 0x1bd   :  { %1068 = vst.msk [vmem:[#allocation3 + $0x20] sm:$0xff] %vm168_vm6, %v1064_v4  ;;  %2003 = vmatprep.subr.mxu1 %v1263_v11 }
 0x1be   :  { %v1270_v32 = vand.u32 4294901760, %v1269_v12  ;;  %2004 = vmatpush3.msra.mxu1 %v1263_v11 }
 0x1c0   :  { %2005 = vmatprep.subr.mxu1 %v1270_v32 }
 0x1c1   :  { %2006 = vmatpush3.msra.mxu1 %v1270_v32 }
 0x1c2   :  { %2019 = vmatprep.subr.mxu1 %v2343_v47 }
 0x1c4   :  { %v1077_v27 = vld [vmem:[#allocation3 + $0x20] sm:$0xff] }
 0x1c5   :  { %v1082_v15 = vrot.slane %v1077_v27, 1  ;;  %v1094_v33 = vrot.slane %v1077_v27, 2 }
 0x1c7   :  { %1085 = vrot.lane.b32.xlu1 %v1082_v15, %s2055_s22  ;;  %1101 = vrot.lane.b32.xlu0 %v1094_v33, %s2056_s25  ;;  %v1096_v43 = vsel %vm77_vm5, %v1094_v33, %v1095_v16  ;;  %vm1698_vm5 = vcmask 123904  }
 0x1cb   :  { %1103 = vrot.lane.b32.xlu1 %v1096_v43, %s2056_s25 }
 0x227   :  { %v1084_v17 = vpop.permute.xlu0 %1083 }
 0x228   :  { %v1110_v19 = vsel %vm168_vm6, %v2332_v37, %v1084_v17  ;;  %v1100_v20 = vpop.permute.xlu1 %1099  ;;  %v1109_v22 = vsel %vm168_vm6, %v1073_v18, %v1084_v17 }
 0x229   :  { %v1114_v24 = vsel %vm182_vm8, %v1110_v19, %v1100_v20 }
 0x22a   :  { %v1123_v29 = vrot.slane %v1114_v24, 7 }
 0x22b   :  { %v1098_v26 = vpop.permute.xlu0 %1097 }
 0x22c   :  { %v1113_v28 = vsel %vm182_vm8, %v1109_v22, %v1098_v26 }
 0x22d   :  { %v1122_v5 = vrot.slane %v1113_v28, 7 }
 0x22f   :  { %v1124_v35 = vsel %vm1121_vm7, %v1122_v5, %v1123_v29 }
 0x230   :  { %v1133_v31 = vsel %vm1132_vm9, %v1124_v35, 0 }
 0x231   :  { %v1205_v38 = vand.u32 4294901760, %v1133_v31 }
 0x233   :  { %2007 = vmatprep.mubr.f32.mxu1 %v1205_v38  ;;  %v1206_v7 = vsub.f32 %v1133_v31, %v1205_v38 }
 0x235   :  { %v1207_v37 = vand.u32 4294901760, %v1206_v7 }
 0x237   :  { %v1208_v39 = vsub.f32 %v1206_v7, %v1207_v37 }
 0x239   :  { %v1209_v41 = vand.u32 4294901760, %v1208_v39  ;;  %v1086_v21 = vpop.permute.xlu1 %1085  ;;  %v1102_v23 = vpop.permute.xlu0 %1101 }
 0x23a   :  { %v1111_v25 = vsel %vm168_vm6, %v1076_v40, %v1086_v21  ;;  %v1112_v34 = vsel %vm168_vm6, %v1077_v27, %v1086_v21 }
 0x23b   :  { %1998 = vmatprep.mubr.f32.mxu0 %v1209_v41  ;;  %v1115_v30 = vsel %vm182_vm8, %v1111_v25, %v1102_v23 }
 0x23c   :  { %v1125_v42 = vrot.slane %v1115_v30, 7 }
 0x23d   :  { %v1104_v36 = vpop.permute.xlu1 %1103 }
 0x23e   :  { %v1116_v44 = vsel %vm182_vm8, %v1112_v34, %v1104_v36 }
 0x23f   :  { %v1126_v45 = vrot.slane %v1116_v44, 7 }
 0x241   :  { %v1127_v46 = vsel %vm1121_vm7, %v1125_v42, %v1126_v45 }
 0x242   :  { %v1135_v48 = vsel %vm1132_vm9, %v1127_v46, 0 }
 0x243   :  { %v1215_v49 = vand.u32 4294901760, %v1135_v48 }
 0x245   :  { %v1216_v6 = vsub.f32 %v1135_v48, %v1215_v49  ;;  %2008 = vmatmul.mubr.f32.vlgmr.msra.gmra.mxu1 %v1215_v49 }
 0x246   :  { %2020 = vmatpush3.msra.mxu1 %v2343_v47  ;;  %2025 = vmatprep.mubr.f32.mxu1 %v1207_v37 }
 0x247   :  { %2021 = vmatprep.subr.mxu1 %v2353_v52  ;;  %v1217_v50 = vand.u32 4294901760, %v1216_v6 }
 0x248   :  { %2022 = vmatpush3.msra.mxu1 %v2353_v52 }
 0x249   :  { %2023 = vmatprep.subr.mxu1 %v2368_v60  ;;  %v1218_v51 = vsub.f32 %v1216_v6, %v1217_v50 }
 0x24a   :  { %2024 = vmatpush3.msra.mxu1 %v2368_v60 }
 0x24b   :  { %v1219_v53 = vand.u32 4294901760, %v1218_v51  ;;  %2026 = vmatmul.mubr.f32.vlgmr.msra.gmra.mxu1 %v1217_v50  ;;  %2037 = vmatprep.subr.mxu1 %v2343_v47 }
 0x24c   :  { %2038 = vmatpush3.msra.mxu1 %v2343_v47  ;;  %2043 = vmatprep.mubr.f32.mxu1 %v1205_v38 }
 0x24d   :  { %2039 = vmatprep.subr.mxu1 %v2353_v52  ;;  %1999 = vmatmul.mubr.f32.vlgmr.msra.gmra.mxu0 %v1219_v53 }
 0x24e   :  { %2011 = vmatpush3.msra.mxu0 %v2351_v2  ;;  %2040 = vmatpush3.msra.mxu1 %v2353_v52  ;;  %v1845_v2 = vld [vmem:[%s2472_s1 + $0x30] ss:$0 sm:$0xff] }
 0x24f   :  { %2012 = vmatprep.subr.mxu0 %v2366_v59  ;;  %2016 = vmatprep.mubr.f32.mxu0 %v1206_v7 }
 0x250   :  { %2041 = vmatprep.subr.mxu1 %v2368_v60  ;;  %2013 = vmatpush3.msra.mxu0 %v2366_v59 }
 0x251   :  { %2042 = vmatpush3.msra.mxu1 %v2368_v60  ;;  %2014 = vmatprep.subr.mxu0 %v2380_v3 }
 0x252   :  { %2044 = vmatmul.mubr.f32.vlgmr.msra.gmra.mxu1 %v1215_v49  ;;  %2015 = vmatpush3.msra.mxu0 %v2380_v3 }
 0x253   :  { %2017 = vmatmul.mubr.f32.vlgmr.msra.gmra.mxu0 %v1216_v6  ;;  %2028 = vmatprep.subr.mxu0 %v2363_v58 }
 0x254   :  { %2029 = vmatpush3.msra.mxu0 %v2363_v58  ;;  %2034 = vmatprep.mubr.f32.mxu0 %v1205_v38 }
 0x255   :  { %2030 = vmatprep.subr.mxu0 %v2377_v1 }
 0x256   :  { %2031 = vmatpush3.msra.mxu0 %v2377_v1 }
 0x257   :  { %2032 = vmatprep.subr.mxu0 %v2389_v10 }
 0x258   :  { %2033 = vmatpush3.msra.mxu0 %v2389_v10 }
 0x259   :  { %2035 = vmatmul.mubr.f32.vlgmr.msra.gmra.mxu0 %v1215_v49 }
 0x305   :  { %v2009_v47 = vpop.f32.mrf.mxu1 }
 0x307   :  { %v1307_v55 = vpop.f32.mrf.mxu1 }
 0x30b   :  { %v2027_v60 = vpop.f32.mrf.mxu1 }
 0x30d   :  { %v2000_v52 = vpop.f32.mrf.mxu0  ;;  %v1474_v1 = vpop.f32.mrf.mxu1 }
 0x30e   :  { %v1222_v54 = vadd.f32 %v2000_v52, %v1845_v2 }
 0x30f   :  { %v1211_v56 = vpop.f32.mrf.mxu0 }
 0x310   :  { %v1212_v57 = vadd.f32 %v1845_v2, %v1211_v56  ;;  %v1314_v58 = vadd.f32 %v2009_v47, %v1222_v54 }
 0x312   :  { %v1308_v59 = vadd.f32 %v1307_v55, %v1212_v57  ;;  %v2045_v4 = vpop.f32.mrf.mxu1 }
 0x313   :  { %v2018_v61 = vpop.f32.mrf.mxu0 }
 0x314   :  { %v1399_v62 = vadd.f32 %v2018_v61, %v1314_v58  ;;  %v1642_v14 = vpop.f32.mrf.mxu1 }
 0x315   :  { %v1391_v63 = vpop.f32.mrf.mxu0 }
 0x316   :  { %v1392_v0 = vadd.f32 %v1391_v63, %v1308_v59  ;;  %v1483_v3 = vadd.f32 %v2027_v60, %v1399_v62 }
 0x318   :  { %v1475_v10 = vadd.f32 %v1474_v1, %v1392_v0 }
 0x319   :  { %v2036_v8 = vpop.f32.mrf.mxu0 }
 0x31a   :  { %v1569_v9 = vadd.f32 %v2036_v8, %v1483_v3 }
 0x31b   :  { %v1562_v11 = vpop.f32.mrf.mxu0 }
 0x31c   :  { %v1649_v12 = vadd.f32 %v2045_v4, %v1569_v9  ;;  %v1563_v32 = vadd.f32 %v1562_v11, %v1475_v10 }
 0x31e   :  { %v1653_v27 = vmax.f32 %v1649_v12, 0.0  ;;  %v1643_v15 = vadd.f32 %v1642_v14, %v1563_v32 }
 0x320   :  { %v1673_v33 = vcombine.high %v1653_v27, %v1653_v27  ;;  %v1680_v16 = vrot.slane %v1653_v27, %v2298_v13  ;;  %v1652_v43 = vmax.f32 %v1643_v15, 0.0 }
 0x322   :  { %v1687_v17 = vrot.slane %v1673_v33, %v2298_v13  ;;  %v1688_v18 = vcombine.high %v1680_v16, %v1680_v16  ;;  %v1727_v19 = vsel %vm1698_vm5, %v1680_v16, -inf  ;;  %v1656_v20 = vcombine.high %v1652_v43, %v1652_v43 }
 0x323   :  { %v1728_v24 = vrot.slane %v1727_v19, 4  ;;  %v1663_v22 = vrot.slane %v1652_v43, %v2298_v13 }
 0x324   :  { %v1689_v26 = vcombine.high %v1687_v17, %v1687_v17  ;;  %v1734_v28 = vsel %vm1698_vm5, %v1688_v18, -inf  ;;  %v1741_v29 = vsel %vm1698_vm5, %v1687_v17, -inf  ;;  %v1670_v5 = vrot.slane %v1656_v20, %v2298_v13 }
 0x325   :  { %v1729_v35 = vmax.f32 %v1727_v19, %v1728_v24  ;;  %v1735_v31 = vrot.slane %v1734_v28, 4  ;;  %v1742_v38 = vrot.slane %v1741_v29, 4  ;;  %v1671_v7 = vcombine.high %v1663_v22, %v1663_v22 }
 0x326   :  { %v1672_v37 = vcombine.high %v1670_v5, %v1670_v5  ;;  %v1699_v39 = vsel %vm1698_vm5, %v1663_v22, -inf  ;;  %v1713_v40 = vsel %vm1698_vm5, %v1670_v5, -inf  ;;  %v1748_v41 = vsel %vm1698_vm5, %v1689_v26, -inf }
 0x327   :  { %v1730_v21 = vrot.slane %v1729_v35, 2  ;;  %v1736_v23 = vmax.f32 %v1734_v28, %v1735_v31  ;;  %v1743_v25 = vmax.f32 %v1741_v29, %v1742_v38  ;;  %v1700_v30 = vrot.slane %v1699_v39, 4 }
 0x328   :  { %v1706_v34 = vsel %vm1698_vm5, %v1671_v7, -inf  ;;  %v1714_v42 = vrot.slane %v1713_v40, 4  ;;  %v1749_v36 = vrot.slane %v1748_v41, 4  ;;  %v1720_v13 = vsel %vm1698_vm5, %v1672_v37, -inf }
 0x329   :  { %v1731_v44 = vmax.f32 %v1729_v35, %v1730_v21  ;;  %v1737_v45 = vrot.slane %v1736_v23, 2  ;;  %v1701_v46 = vmax.f32 %v1699_v39, %v1700_v30  ;;  %v1707_v48 = vrot.slane %v1706_v34, 4 }
 0x32a   :  { %v1715_v49 = vmax.f32 %v1713_v40, %v1714_v42  ;;  %v1744_v6 = vrot.slane %v1743_v25, 2  ;;  %v1750_v50 = vmax.f32 %v1748_v41, %v1749_v36  ;;  %v1721_v51 = vrot.slane %v1720_v13, 4 }
 0x32b   :  { %v1702_v53 = vrot.slane %v1701_v46, 2  ;;  %v1708_v47 = vmax.f32 %v1706_v34, %v1707_v48  ;;  %v1732_v2 = vrot.slane %v1731_v44, 1  ;;  %v1738_v52 = vmax.f32 %v1736_v23, %v1737_v45 }
 0x32c   :  { %v1745_v54 = vmax.f32 %v1743_v25, %v1744_v6  ;;  %v1751_v55 = vrot.slane %v1750_v50, 2  ;;  %v1716_v56 = vrot.slane %v1715_v49, 2  ;;  %v1722_v57 = vmax.f32 %v1720_v13, %v1721_v51 }
 0x32d   :  { %v1703_v58 = vmax.f32 %v1701_v46, %v1702_v53  ;;  %v1709_v59 = vrot.slane %v1708_v47, 2  ;;  %v1739_v60 = vrot.slane %v1738_v52, 1  ;;  %v1733_v1 = vmax.f32 %v1731_v44, %v1732_v2 }
 0x32e   :  { %v1746_v61 = vrot.slane %v1745_v54, 1  ;;  %v1752_v62 = vmax.f32 %v1750_v50, %v1751_v55  ;;  %v1717_v63 = vmax.f32 %v1715_v49, %v1716_v56  ;;  %v1723_v0 = vrot.slane %v1722_v57, 2 }
 0x32f   :  { %v1740_v3 = vmax.f32 %v1738_v52, %v1739_v60  ;;  %v1704_v4 = vrot.slane %v1703_v58, 1  ;;  %v1710_v8 = vmax.f32 %v1708_v47, %v1709_v59 }
 0x330   :  { %v1747_v9 = vmax.f32 %v1745_v54, %v1746_v61  ;;  %v1753_v10 = vrot.slane %v1752_v62, 1  ;;  %v1718_v11 = vrot.slane %v1717_v63, 1  ;;  %v1724_v12 = vmax.f32 %v1722_v57, %v1723_v0 }
 0x331   :  { %v1801_v32 = vsel %vm1044_vm13, %v1740_v3, %v1733_v1  ;;  %v1711_v14 = vrot.slane %v1710_v8, 1  ;;  %v1705_v43 = vmax.f32 %v1703_v58, %v1704_v4 }
 0x332   :  { %v1754_v27 = vmax.f32 %v1752_v62, %v1753_v10  ;;  %v1802_v15 = vsel %vm1046_vm14, %v1747_v9, %v1801_v32  ;;  %v1719_v33 = vmax.f32 %v1717_v63, %v1718_v11  ;;  %v1725_v16 = vrot.slane %v1724_v12, 1 }
 0x333   :  { %v1712_v17 = vmax.f32 %v1710_v8, %v1711_v14 }
 0x334   :  { %v1803_v18 = vsel %vm1048_vm15, %v1754_v27, %v1802_v15  ;;  %v1726_v19 = vmax.f32 %v1724_v12, %v1725_v16 }
 0x335   :  { %1805 = vxpose.xlu1.b32.start.end [1/1] (short) (narrow) %v1803_v18, 16  ;;  %v1759_v20 = vsel %vm1044_vm13, %v1712_v17, %v1705_v43 }
 0x336   :  { %v1760_v24 = vsel %vm1046_vm14, %v1719_v33, %v1759_v20 }
 0x337   :  { %v1761_v22 = vsel %vm1048_vm15, %v1726_v19, %v1760_v24 }
 0x338   :  { %1763 = vxpose.xlu0.b32.start.end [1/1] (short) (narrow) %v1761_v22, 16 }
 0x3b1   :  { %v1821_v26 = vpop.trf.xlu1 }
 0x3b2   :  { %1846 = vst.msk [vmem:[%s2473_s2 + $0x10] sm:$0xff] %vm25_vm0, %v1821_v26 }
 0x3b4   :  { %v1779_v28 = vpop.trf.xlu0 }
 0x3b5   :  { %1795 = vst.msk [vmem:[%s2473_s2] sm:$0xff] %vm25_vm0, %v1779_v28  ;;  %v1822_v29 = vpop.trf.xlu1 }
 0x3b6   :  { %1847 = vst.msk [vmem:[%s2473_s2 + $0x18] sm:$0xff] %vm25_vm0, %v1822_v29 }
 0x3b8   :  { %v1780_v5 = vpop.trf.xlu0 }
 0x3b9   :  { %1796 = vst.msk [vmem:[%s2473_s2 + $0x8] sm:$0xff] %vm25_vm0, %v1780_v5 }

</bundles_post_ra>
